<compile_context>
chip_gen: v6e
topology: v6e:2x2x1
jax: 0.10.0
libtpu: 0.0.40
codegen_flags: <defaults>
</compile_context>

<pallas_src>
import functools

import jax
import jax.numpy as jnp
from jax.experimental import pallas as pl
from jax.experimental.pallas import tpu as pltpu


def _cheb_kernel(xT_ref, lT_ref, w_ref, b_ref, o_ref, *, K: int, BB: int):
    # xT_ref: (BB, Fin, N)   compute dtype (bf16 default / f32)
    # lT_ref: (BB, N, N)     compute dtype, holds L^T (or L if symmetric)
    # w_ref:  (K, Fout, Fin) compute dtype (stacked PyTorch lins[k].weight)
    # b_ref:  (Fout, 1)      f32 (sum_k b_k, pre-summed in the wrapper)
    # o_ref:  (BB, Fout, N)  output dtype
    f32 = jnp.float32
    w_k = [w_ref[k] for k in range(K)]        # tiny whole-tile reads, once
    b = b_ref[...]                            # (Fout, 1) f32

    for i in range(BB):                       # BB is small and static
        lt = lT_ref[i]                        # (N, N)
        x0 = xT_ref[i]                        # (Fin, N)
        cdt = x0.dtype

        # T_0 projection (accumulated per k; no basis scratch).
        acc = jnp.dot(w_k[0], x0, preferred_element_type=f32)      # (Fout, N)

        if K > 1:
            # T_1:  x1^T = x0^T @ L^T   (== (L @ x0)^T).
            x1_f32 = jnp.dot(x0, lt, preferred_element_type=f32)   # (Fin, N)
            x1 = x1_f32.astype(cdt)
            acc = acc + jnp.dot(w_k[1], x1, preferred_element_type=f32)

            # T_k = 2 L T_{k-1} - T_{k-2}.  Elementwise state stays in f32;
            # the factor 2 is folded into the exact compute-dtype doubling of
            # the dot operand (no f32 multiply of the dot result).
            xm2_f32 = x0.astype(f32)
            xm1, xm1_f32 = x1, x1_f32
            for k in range(2, K):
                xk_f32 = (jnp.dot(xm1 + xm1, lt, preferred_element_type=f32)
                          - xm2_f32)
                xk = xk_f32.astype(cdt)
                acc = acc + jnp.dot(w_k[k], xk, preferred_element_type=f32)
                xm2_f32 = xm1_f32
                xm1, xm1_f32 = xk, xk_f32

        o_ref[i] = (acc + b).astype(o_ref.dtype)


def _physical_vmem_bytes() -> int:
    try:
        cap = getattr(pltpu.get_tpu_info(), "vmem_capacity_bytes", None)
        if cap:
            return int(cap)
    except Exception:
        pass
    return 64 * 1024 * 1024        # conservative (v7x per-core VMEM)


def _pick_batch_block(B, N, itemsize, requested=None):
    """Batch elements per grid step (amortizes per-step overhead at small N)."""
    if requested is not None:
        assert B % requested == 0, "batch_block must divide the batch size"
        return int(requested)
    l_block_budget = 8 << 20       # keep one L block modest (double-buffering)
    max_bb = 8                     # bound the static unroll inside the kernel
    bb = 1
    for cand in range(1, min(B, max_bb) + 1):
        if B % cand == 0 and cand * N * N * itemsize <= l_block_budget:
            bb = cand
    return bb


def _plan_vmem(BB, N, Fin, Fout, K, cdt, odt):
    """Returns (L buffer count, vmem_limit_bytes) clamped to physical VMEM."""
    cb = jnp.dtype(cdt).itemsize
    ob = jnp.dtype(odt).itemsize
    l_block = BB * N * N * cb
    aux = 2 * (BB * Fin * N * cb + BB * Fout * N * ob
               + K * Fout * Fin * cb + Fout * 4)
    live_f32 = (3 * Fin * N + Fout * N) * 4          # recurrence state + acc
    phys = _physical_vmem_bytes()
    budget = phys - (6 << 20)                        # compiler headroom
    l_buffers = 2 if (2 * l_block + aux + live_f32) <= budget else 1
    est = int(1.25 * (l_buffers * l_block + aux + live_f32)) + (2 << 20)
    limit = max(est, 32 << 20)
    limit = min(limit, phys - (2 << 20))
    return l_buffers, int(limit)


def dense_cheb_conv_v2(x, L, weights, biases, *, compute_dtype=jnp.bfloat16,
                       out_dtype=None, assume_symmetric_l=False,
                       batch_block=None):
    """DenseChebConvV2 forward.

    x:       (B, N, Fin)     node features
    L:       (B, N, N)       scaled graph Laplacian
    weights: (K, Fout, Fin)  stacked PyTorch lins[k].weight
    biases:  (K, Fout)       stacked PyTorch lins[k].bias
    compute_dtype: dtype fed to the MXU for L/x/W (default bfloat16; all
        accumulation is f32 regardless).  Keep L stored in this dtype upstream
        for the full HBM-bandwidth benefit — the wrapper cast of an f32 L is
        itself one extra HBM pass over L.
    assume_symmetric_l: skip the L transpose (valid for symmetric Laplacians).
    """
    B, N, Fin = x.shape
    K, Fout, Fin_w = weights.shape
    assert K >= 1
    assert Fin_w == Fin
    assert L.shape == (B, N, N)
    assert biases.shape == (K, Fout)

    cdt = jnp.dtype(compute_dtype)
    odt = jnp.dtype(out_dtype) if out_dtype is not None else x.dtype

    # Transposed carries: x as (B, Fin, N); L as L^T unless symmetric (the
    # transpose fuses with the dtype cast; x / out transposes are tiny).
    xT = jnp.swapaxes(x, 1, 2).astype(cdt)
    lT = (L if assume_symmetric_l else jnp.swapaxes(L, 1, 2)).astype(cdt)
    w = weights.astype(cdt)                                     # (K, Fout, Fin)
    b_sum = jnp.sum(biases.astype(jnp.float32), axis=0).reshape(Fout, 1)

    BB = _pick_batch_block(B, N, jnp.dtype(cdt).itemsize, batch_block)
    l_buffers, vmem_limit = _plan_vmem(BB, N, Fin, Fout, K, cdt, odt)

    l_spec_kwargs = {}
    if l_buffers == 1:
        # Double-buffered L does not fit (v7x 64 MiB): single-buffer it — the
        # kernel is DMA-bound on L so the lost overlap costs only a few %.
        l_spec_kwargs = dict(pipeline_mode=pl.Buffered(1))
    l_spec = pl.BlockSpec((BB, N, N), lambda b: (b, 0, 0), **l_spec_kwargs)

    kernel = functools.partial(_cheb_kernel, K=K, BB=BB)

    cb = jnp.dtype(cdt).itemsize
    ob = jnp.dtype(odt).itemsize
    flops = (2 * B * (K - 1) * Fin * N * N          # Chebyshev recurrence dots
             + 2 * B * K * Fout * Fin * N           # per-k projections
             + 3 * B * max(K - 2, 0) * Fin * N      # doubling + subtract
             + B * Fout * N)                        # bias add
    bytes_accessed = (B * N * N * cb + B * Fin * N * cb
                      + K * Fout * Fin * cb + Fout * 4 + B * Fout * N * ob)
    cost = pl.CostEstimate(flops=int(flops), transcendentals=0,
                           bytes_accessed=int(bytes_accessed))

    out_t = pl.pallas_call(
        kernel,
        out_shape=jax.ShapeDtypeStruct((B, Fout, N), odt),
        grid_spec=pltpu.PrefetchScalarGridSpec(
            num_scalar_prefetch=0,
            grid=(B // BB,),
            in_specs=[
                pl.BlockSpec((BB, Fin, N), lambda b: (b, 0, 0)),   # x^T
                l_spec,                                            # L^T
                pl.BlockSpec((K, Fout, Fin), lambda b: (0, 0, 0)), # weights
                pl.BlockSpec((Fout, 1), lambda b: (0, 0)),         # bias sum
            ],
            out_specs=pl.BlockSpec((BB, Fout, N), lambda b: (b, 0, 0)),
        ),
        compiler_params=pltpu.CompilerParams(
            dimension_semantics=("parallel",),
            vmem_limit_bytes=vmem_limit,
        ),
        cost_estimate=cost,
    )(xT, lT, w, b_sum)

    return jnp.swapaxes(out_t, 1, 2)                  # (B, N, Fout)


def _reference(x, L, weights, biases, compute_dtype=jnp.bfloat16):
    """Plain-JAX reference mirroring the kernel's mixed-precision policy."""
    f32 = jnp.float32
    cdt = jnp.dtype(compute_dtype)
    K = weights.shape[0]
    xc = x.astype(cdt)
    Lc = L.astype(cdt)
    wc = weights.astype(cdt)                          # (K, Fout, Fin)

    cheb = [xc]
    if K > 1:
        x1_f32 = jnp.einsum("bnm,bmf->bnf", Lc, xc,
                            preferred_element_type=f32, precision="highest")
        x1 = x1_f32.astype(cdt)
        cheb.append(x1)
        xm2_f32 = xc.astype(f32)
        xm1, xm1_f32 = x1, x1_f32
        for _ in range(2, K):
            xk_f32 = 2.0 * jnp.einsum("bnm,bmf->bnf", Lc, xm1,
                                      preferred_element_type=f32,
                                      precision="highest") - xm2_f32
            xk = xk_f32.astype(cdt)
            cheb.append(xk)
            xm2_f32 = xm1_f32
            xm1, xm1_f32 = xk, xk_f32

    out = sum(jnp.einsum("bnf,of->bno", cheb[k], wc[k],
                         preferred_element_type=f32, precision="highest")
              for k in range(K))
    out = out + jnp.sum(biases.astype(f32), axis=0)
    return out.astype(x.dtype)


if __name__ == "__main__":
    B, N, Fin, Fout, K = 2, 64, 8, 16, 3

    key = jax.random.PRNGKey(0)
    kx, kl, kw, kb = jax.random.split(key, 4)

    x = jax.random.normal(kx, (B, N, Fin), dtype=jnp.float32)

    # Symmetric, roughly normalized Laplacian-like matrix.
    A = jax.random.normal(kl, (B, N, N), dtype=jnp.float32)
    L = (A + jnp.swapaxes(A, 1, 2)) / (2.0 * jnp.sqrt(float(N)))

    # reset_parameters(): weight ~ trunc_normal(std=0.2), bias ~ normal(std=0.2).
    # Weights in PyTorch Linear layout (Fout, Fin), stacked over K.
    weights = 0.2 * jax.random.truncated_normal(
        kw, -2.0, 2.0, (K, Fout, Fin), dtype=jnp.float32)
    biases = 0.2 * jax.random.normal(kb, (K, Fout), dtype=jnp.float32)

    # Default path: bf16 MXU operands, f32 accumulation.
    out_bf16 = jax.block_until_ready(dense_cheb_conv_v2(x, L, weights, biases))
    ref_bf16 = _reference(x, L, weights, biases, compute_dtype=jnp.bfloat16)
    assert out_bf16.shape == (B, N, Fout)
    assert jnp.allclose(out_bf16, ref_bf16, atol=3e-2, rtol=3e-2)

    # Symmetric-L fast path (skips the wrapper-side L transpose).
    out_sym = jax.block_until_ready(
        dense_cheb_conv_v2(x, L, weights, biases, assume_symmetric_l=True))
    assert jnp.allclose(out_sym, ref_bf16, atol=3e-2, rtol=3e-2)

    # Full-precision fallback path.
    out_f32 = jax.block_until_ready(
        dense_cheb_conv_v2(x, L, weights, biases, compute_dtype=jnp.float32))
    ref_f32 = _reference(x, L, weights, biases, compute_dtype=jnp.float32)
    assert out_f32.shape == (B, N, Fout)
    assert jnp.allclose(out_f32, ref_f32, atol=2e-3, rtol=2e-3)

    print("KERNEL_OK")
</pallas_src>

<mosaic_0001>
module attributes {stable_mosaic.version = 11 : i64} {
  func.func @_cheb_kernel(%arg0: i32, %arg1: memref<2x8x64xbf16, #tpu.memory_space<vmem>>, %arg2: memref<2x64x64xbf16, #tpu.memory_space<vmem>>, %arg3: memref<3x16x8xbf16, #tpu.memory_space<vmem>>, %arg4: memref<16x1xf32, #tpu.memory_space<vmem>>, %arg5: memref<2x16x64xf32, #tpu.memory_space<vmem>>) attributes {dimension_semantics = [#tpu.dimension_semantics<parallel>], iteration_bounds = array<i64: 1>, scalar_prefetch = 0 : i64, scratch_operands = 0 : i64, tpu.core_type = #tpu.core_type<tc>, window_params = [{transform_indices = @transform_0, window_bounds = array<i64: 2, 8, 64>}, {transform_indices = @transform_1, window_bounds = array<i64: 2, 64, 64>}, {pipeline_mode = #tpu.pipeline_mode<synchronous>, transform_indices = @transform_2, window_bounds = array<i64: 3, 16, 8>}, {pipeline_mode = #tpu.pipeline_mode<synchronous>, transform_indices = @transform_3, window_bounds = array<i64: 16, 1>}, {transform_indices = @transform_4, window_bounds = array<i64: 2, 16, 64>}]} {
    %c0 = arith.constant 0 : index
    %c0_0 = arith.constant 0 : index
    %c0_1 = arith.constant 0 : index
    %0 = vector.load %arg3[%c0, %c0_0, %c0_1] : memref<3x16x8xbf16, #tpu.memory_space<vmem>>, vector<1x16x8xbf16>
    %1 = vector.shape_cast %0 : vector<1x16x8xbf16> to vector<16x8xbf16>
    %c1 = arith.constant 1 : index
    %c0_2 = arith.constant 0 : index
    %c0_3 = arith.constant 0 : index
    %2 = vector.load %arg3[%c1, %c0_2, %c0_3] : memref<3x16x8xbf16, #tpu.memory_space<vmem>>, vector<1x16x8xbf16>
    %3 = vector.shape_cast %2 : vector<1x16x8xbf16> to vector<16x8xbf16>
    %c2 = arith.constant 2 : index
    %c0_4 = arith.constant 0 : index
    %c0_5 = arith.constant 0 : index
    %4 = vector.load %arg3[%c2, %c0_4, %c0_5] : memref<3x16x8xbf16, #tpu.memory_space<vmem>>, vector<1x16x8xbf16>
    %5 = vector.shape_cast %4 : vector<1x16x8xbf16> to vector<16x8xbf16>
    %c0_6 = arith.constant 0 : index
    %c0_7 = arith.constant 0 : index
    %6 = vector.load %arg4[%c0_6, %c0_7] : memref<16x1xf32, #tpu.memory_space<vmem>>, vector<16x1xf32>
    %c0_8 = arith.constant 0 : index
    %c0_9 = arith.constant 0 : index
    %c0_10 = arith.constant 0 : index
    %7 = vector.load %arg2[%c0_8, %c0_9, %c0_10] : memref<2x64x64xbf16, #tpu.memory_space<vmem>>, vector<1x64x64xbf16>
    %8 = vector.shape_cast %7 : vector<1x64x64xbf16> to vector<64x64xbf16>
    %c0_11 = arith.constant 0 : index
    %c0_12 = arith.constant 0 : index
    %c0_13 = arith.constant 0 : index
    %9 = vector.load %arg1[%c0_11, %c0_12, %c0_13] : memref<2x8x64xbf16, #tpu.memory_space<vmem>>, vector<1x8x64xbf16>
    %10 = vector.shape_cast %9 : vector<1x8x64xbf16> to vector<8x64xbf16>
    %cst = arith.constant dense<0.000000e+00> : vector<16x64xf32>
    %11 = tpu.matmul %1, %10, %cst {dimension_numbers = #tpu.dot_dimension_numbers<[1], [0], [0], [1], [0, 0, 1, 1], [], []>} : vector<16x8xbf16>, vector<8x64xbf16>, vector<16x64xf32> -> vector<16x64xf32>
    %cst_14 = arith.constant dense<0.000000e+00> : vector<8x64xf32>
    %12 = tpu.matmul %10, %8, %cst_14 {dimension_numbers = #tpu.dot_dimension_numbers<[1], [0], [0], [1], [0, 0, 1, 1], [], []>} : vector<8x64xbf16>, vector<64x64xbf16>, vector<8x64xf32> -> vector<8x64xf32>
    %13 = arith.truncf %12 : vector<8x64xf32> to vector<8x64xbf16>
    %cst_15 = arith.constant dense<0.000000e+00> : vector<16x64xf32>
    %14 = tpu.matmul %3, %13, %cst_15 {dimension_numbers = #tpu.dot_dimension_numbers<[1], [0], [0], [1], [0, 0, 1, 1], [], []>} : vector<16x8xbf16>, vector<8x64xbf16>, vector<16x64xf32> -> vector<16x64xf32>
    %15 = arith.addf %11, %14 : vector<16x64xf32>
    %16 = arith.extf %10 : vector<8x64xbf16> to vector<8x64xf32>
    %17 = arith.addf %13, %13 : vector<8x64xbf16>
    %cst_16 = arith.constant dense<0.000000e+00> : vector<8x64xf32>
    %18 = tpu.matmul %17, %8, %cst_16 {dimension_numbers = #tpu.dot_dimension_numbers<[1], [0], [0], [1], [0, 0, 1, 1], [], []>} : vector<8x64xbf16>, vector<64x64xbf16>, vector<8x64xf32> -> vector<8x64xf32>
    %19 = arith.subf %18, %16 : vector<8x64xf32>
    %20 = arith.truncf %19 : vector<8x64xf32> to vector<8x64xbf16>
    %cst_17 = arith.constant dense<0.000000e+00> : vector<16x64xf32>
    %21 = tpu.matmul %5, %20, %cst_17 {dimension_numbers = #tpu.dot_dimension_numbers<[1], [0], [0], [1], [0, 0, 1, 1], [], []>} : vector<16x8xbf16>, vector<8x64xbf16>, vector<16x64xf32> -> vector<16x64xf32>
    %22 = arith.addf %15, %21 : vector<16x64xf32>
    %23 = vector.broadcast %6 : vector<16x1xf32> to vector<16x64xf32>
    %24 = arith.addf %22, %23 : vector<16x64xf32>
    %c0_18 = arith.constant 0 : index
    %c0_19 = arith.constant 0 : index
    %c0_20 = arith.constant 0 : index
    %25 = vector.load %arg5[%c0_18, %c0_19, %c0_20] : memref<2x16x64xf32, #tpu.memory_space<vmem>>, vector<1x16x64xf32>
    %26 = vector.shape_cast %25 : vector<1x16x64xf32> to vector<16x64xf32>
    %27 = vector.shape_cast %24 : vector<16x64xf32> to vector<1x16x64xf32>
    tpu.vector_store %arg5[%c0_18, %c0_19, %c0_20], %27 {strides = array<i32>} : memref<2x16x64xf32, #tpu.memory_space<vmem>>, vector<1x16x64xf32>,
    %c1_21 = arith.constant 1 : index
    %c0_22 = arith.constant 0 : index
    %c0_23 = arith.constant 0 : index
    %28 = vector.load %arg2[%c1_21, %c0_22, %c0_23] : memref<2x64x64xbf16, #tpu.memory_space<vmem>>, vector<1x64x64xbf16>
    %29 = vector.shape_cast %28 : vector<1x64x64xbf16> to vector<64x64xbf16>
    %c1_24 = arith.constant 1 : index
    %c0_25 = arith.constant 0 : index
    %c0_26 = arith.constant 0 : index
    %30 = vector.load %arg1[%c1_24, %c0_25, %c0_26] : memref<2x8x64xbf16, #tpu.memory_space<vmem>>, vector<1x8x64xbf16>
    %31 = vector.shape_cast %30 : vector<1x8x64xbf16> to vector<8x64xbf16>
    %cst_27 = arith.constant dense<0.000000e+00> : vector<16x64xf32>
    %32 = tpu.matmul %1, %31, %cst_27 {dimension_numbers = #tpu.dot_dimension_numbers<[1], [0], [0], [1], [0, 0, 1, 1], [], []>} : vector<16x8xbf16>, vector<8x64xbf16>, vector<16x64xf32> -> vector<16x64xf32>
    %cst_28 = arith.constant dense<0.000000e+00> : vector<8x64xf32>
    %33 = tpu.matmul %31, %29, %cst_28 {dimension_numbers = #tpu.dot_dimension_numbers<[1], [0], [0], [1], [0, 0, 1, 1], [], []>} : vector<8x64xbf16>, vector<64x64xbf16>, vector<8x64xf32> -> vector<8x64xf32>
    %34 = arith.truncf %33 : vector<8x64xf32> to vector<8x64xbf16>
    %cst_29 = arith.constant dense<0.000000e+00> : vector<16x64xf32>
    %35 = tpu.matmul %3, %34, %cst_29 {dimension_numbers = #tpu.dot_dimension_numbers<[1], [0], [0], [1], [0, 0, 1, 1], [], []>} : vector<16x8xbf16>, vector<8x64xbf16>, vector<16x64xf32> -> vector<16x64xf32>
    %36 = arith.addf %32, %35 : vector<16x64xf32>
    %37 = arith.extf %31 : vector<8x64xbf16> to vector<8x64xf32>
    %38 = arith.addf %34, %34 : vector<8x64xbf16>
    %cst_30 = arith.constant dense<0.000000e+00> : vector<8x64xf32>
    %39 = tpu.matmul %38, %29, %cst_30 {dimension_numbers = #tpu.dot_dimension_numbers<[1], [0], [0], [1], [0, 0, 1, 1], [], []>} : vector<8x64xbf16>, vector<64x64xbf16>, vector<8x64xf32> -> vector<8x64xf32>
    %40 = arith.subf %39, %37 : vector<8x64xf32>
    %41 = arith.truncf %40 : vector<8x64xf32> to vector<8x64xbf16>
    %cst_31 = arith.constant dense<0.000000e+00> : vector<16x64xf32>
    %42 = tpu.matmul %5, %41, %cst_31 {dimension_numbers = #tpu.dot_dimension_numbers<[1], [0], [0], [1], [0, 0, 1, 1], [], []>} : vector<16x8xbf16>, vector<8x64xbf16>, vector<16x64xf32> -> vector<16x64xf32>
    %43 = arith.addf %36, %42 : vector<16x64xf32>
    %44 = vector.broadcast %6 : vector<16x1xf32> to vector<16x64xf32>
    %45 = arith.addf %43, %44 : vector<16x64xf32>
    %c1_32 = arith.constant 1 : index
    %c0_33 = arith.constant 0 : index
    %c0_34 = arith.constant 0 : index
    %46 = vector.load %arg5[%c1_32, %c0_33, %c0_34] : memref<2x16x64xf32, #tpu.memory_space<vmem>>, vector<1x16x64xf32>
    %47 = vector.shape_cast %46 : vector<1x16x64xf32> to vector<16x64xf32>
    %48 = vector.shape_cast %45 : vector<16x64xf32> to vector<1x16x64xf32>
    tpu.vector_store %arg5[%c1_32, %c0_33, %c0_34], %48 {strides = array<i32>} : memref<2x16x64xf32, #tpu.memory_space<vmem>>, vector<1x16x64xf32>,
    return
  }
  func.func @transform_0(%arg0: i32) -> (i32, i32, i32) {
    %c0_i32 = arith.constant 0 : i32
    %c0_i32_0 = arith.constant 0 : i32
    %c0_i32_1 = arith.constant 0 : i32
    return %arg0, %c0_i32, %c0_i32_0 : i32, i32, i32
  }
  func.func @transform_1(%arg0: i32) -> (i32, i32, i32) {
    %c0_i32 = arith.constant 0 : i32
    %c0_i32_0 = arith.constant 0 : i32
    %c0_i32_1 = arith.constant 0 : i32
    return %arg0, %c0_i32, %c0_i32_0 : i32, i32, i32
  }
  func.func @transform_2(%arg0: i32) -> (i32, i32, i32) {
    %c0_i32 = arith.constant 0 : i32
    %c0_i32_0 = arith.constant 0 : i32
    %c0_i32_1 = arith.constant 0 : i32
    %c0_i32_2 = arith.constant 0 : i32
    return %c0_i32, %c0_i32_0, %c0_i32_1 : i32, i32, i32
  }
  func.func @transform_3(%arg0: i32) -> (i32, i32) {
    %c0_i32 = arith.constant 0 : i32
    %c0_i32_0 = arith.constant 0 : i32
    %c0_i32_1 = arith.constant 0 : i32
    return %c0_i32, %c0_i32_0 : i32, i32
  }
  func.func @transform_4(%arg0: i32) -> (i32, i32, i32) {
    %c0_i32 = arith.constant 0 : i32
    %c0_i32_0 = arith.constant 0 : i32
    %c0_i32_1 = arith.constant 0 : i32
    return %arg0, %c0_i32, %c0_i32_0 : i32, i32, i32
  }
}

</mosaic_0001>

<bundles_post_ra>
// kernel: tpu_custom_call.1
= control target key start
LH: loop header
LB: loop body
LE: loop exit
PB: predicated region body
PF: predicated region fallthrough
CT: control target
= control target key end

     0   :  { %9 = vsyncpa [#allocation3], 0  ;;  %s964_s0 = inlined_call_operand.vmem [shape: bf16[2,8,64], index: 0, kind: input, shape index: {}]   ;;  %s965_s1 = inlined_call_operand.hbm [shape: bf16[2,64,64], index: 1, kind: input, shape index: {}]   ;;  %s966_s2 = inlined_call_operand.vmem [shape: bf16[3,16,8], index: 2, kind: input, shape index: {}]   ;;  %s967_s3 = inlined_call_operand.vmem [shape: f32[16,1], index: 3, kind: input, shape index: {}]   ;;  %s968_s4 = inlined_call_operand.hbm [shape: f32[2,16,64], index: 4, kind: output, shape index: {}]  }
   0x1   :  { %10 = vsyncpa [#allocation4], 0  ;;  %s829_s15 = smov [#allocation2]  }
   0x2   :  { %s18_s16 = sshll.u32 %s829_s15, 4  ;;  %s19_s16 = int_to_ptr.vmem [resolvable:$true] %s18_s16 }
   0x3   :  { %s793_s17 = scalar_lea.vmem %s19_s16, 1024  ;;  %p798_p1 = scmp.lt.s32.totalorder %s19_s16, %s19_s16 }
   0x4   :  { %p794_p0 = scmp.ne.s32.totalorder %s19_s16, %s793_s17  ;;  %p799_p2 = scmp.lt.s32.totalorder %s793_s17, %s793_s17 }
   0x6   :  { %p800_p3 = por %p799_p2, %p798_p1 }
   0x8   :  { %p801_p4 = pnand %p800_p3, %p794_p0 }
   0xa   :  { %804 = shalt.err (!%p801_p4)
}
   0xb   :  { %s830_s18 = smov 64   ;;  %s831_s19 = smov 4  }
   0xc   :  { %24 = dma.hbm_to_vmem [thread:$0]  %s965_s1, 1024, %s19_s16, [#allocation3], %s830_s18, %s830_s18, %s831_s19  }
   0xd   :  { %825 = dma.done.wait [#allocation3], 1024  }
   0xe   :  { %826 = vsyncadd [#allocation3], 4294966272  ;;  %v832_v0 = vmov 0.0   ;;  %vm833_vm0 = vmmov 0   ;;  %v774_v1 = vld [vmem:[#allocation2 + $0x18] sm:$0xff]   ;;  %v775_v2 = vld [vmem:[#allocation2 + $0x10] sm:$0xff]  }
   0xf   :  { %680 = vmatprep.subr.bf16.mxu0 %v832_v0  ;;  %688 = vmatprep.mubr.msk.bf16.mxu0 %vm833_vm0, %v832_v0  ;;  %v776_v3 = vld [vmem:[#allocation2 + $0x8] sm:$0xff]   ;;  %v777_v4 = vld [vmem:[#allocation2] sm:$0xff]   ;;  %vm76_vm1 = vcmask 523264   ;;  %vm130_vm2 = vcmask 1043456   ;;  %vm126_vm3 = vcmask 64512   ;;  %v834_v17 = vmov 0  }
  0x10   :  { %692 = vmatprep.subr.bf16.mxu1 %v832_v0  ;;  %694 = vmatprep.mubr.msk.bf16.mxu1 %vm833_vm0, %v832_v0  ;;  %v51_v5 = vld [vmem:[%s964_s0] sm:$0xf]  ;;  %v886_v10 = vld [vmem:[%s966_s2 + $0x8] sm:$0xff]   ;;  %v921_v36 = vld [vmem:[%s966_s2 + $0x10] sm:$0xff]  }
  0x11   :  { %681 = vmatpush3.bf16.msra.mxu0 %v774_v1  ;;  %v183_v12 = vsel %vm130_vm2, %v51_v5, 0  ;;  %v898_v14 = vld [vmem:[%s966_s2] sm:$0xff]   ;;  %773 = vset.pattern.permute.xlu0 %v834_v17  ;;  %v42_v18 = vld [vmem:[%s967_s3 + $0x8] sm:$0xff]  ;;  %v226_v29 = vunpack.c.l.bf16 %v51_v5  ;;  %v781_v38 = vld [vmem:[#allocation2 + $0x38] sm:$0xff]  }
  0x12   :  { %682 = vmatprep.subr.bf16.mxu0 %v832_v0  ;;  %v41_v16 = vld [vmem:[%s967_s3] sm:$0xff]  ;;  %v782_v39 = vld [vmem:[#allocation2 + $0x30] sm:$0xff]   ;;  %v783_v40 = vld [vmem:[#allocation2 + $0x28] sm:$0xff]  }
  0x13   :  { %329 = vperm.xlu0 %773, %v41_v16   ;;  %v784_v41 = vld [vmem:[#allocation2 + $0x20] sm:$0xff]  }
  0x14   :  { %v638_v42 = vld [vmem:[%s964_s0 + $0x4] sm:$0xf]  ;;  %s835_s0 = smov [#allocation5]  }
  0x15   :  { %683 = vmatpush3.bf16.msra.mxu0 %v775_v2  ;;  %v464_v59 = vsel %vm130_vm2, %v638_v42, 0  ;;  %v507_v61 = vunpack.c.l.bf16 %v638_v42  ;;  %s610_s7 = sshll.u32 %s835_s0, 4  ;;  %s611_s7 = int_to_ptr.vmem [resolvable:$true] %s610_s7 }
  0x16   :  { %684 = vmatprep.subr.bf16.mxu0 %v832_v0  ;;  %s805_s8 = scalar_lea.vmem %s611_s7, 512  ;;  %p810_p6 = scmp.lt.s32.totalorder %s611_s7, %s611_s7 }
  0x17   :  { %334 = vperm.xlu0 %773, %v42_v18   ;;  %p806_p5 = scmp.ne.s32.totalorder %s611_s7, %s805_s8  ;;  %p811_p7 = scmp.lt.s32.totalorder %s805_s8, %s805_s8 }
  0x19   :  { %685 = vmatpush3.bf16.msra.mxu0 %v776_v3  ;;  %p812_p8 = por %p811_p7, %p810_p6 }
  0x1a   :  { %686 = vmatprep.subr.bf16.mxu0 %v832_v0 }
  0x1b   :  { %p813_p9 = pnand %p812_p8, %p806_p5 }
  0x1d   :  { %687 = vmatpush3.bf16.msra.mxu0 %v777_v4 }
  0x1e   :  { %716 = vmatprep.subr.bf16.mxu0 %v832_v0 }
  0x20   :  { %689 = vmatmul.mubr.msk.bf16.vlgmr.msra.gmra.mxu0 %vm76_vm1, %v51_v5 }
  0x21   :  { %718 = vmatprep.mubr.msk.bf16.mxu0 %vm833_vm0, %v832_v0 }
  0x8e   :  { %v330_v43 = vpop.permute.xlu0 %329 }
  0x92   :  { %v335_v49 = vpop.permute.xlu0 %334 }
  0xe0   :  { %v114_v6 = vpop.f32.mrf.mxu0 }
  0xe1   :  { %v120_v7 = vpack.c.bf16 %v114_v6, %v114_v6 }
  0xe2   :  { %v690_v8 = vpop.f32.mrf.mxu0 }
  0xe3   :  { %v132_v9 = vsel %vm130_vm2, %v120_v7, 0  ;;  %v227_v15 = vadd.bf16 %v120_v7, %v120_v7 }
  0xe4   :  { %v117_v11 = vpop.f32.mrf.mxu0  ;;  %693 = vmatpush3.bf16.msra.mxu1 %v132_v9 }
  0xe5   :  { %698 = vmatprep.subr.bf16.mxu1 %v832_v0 }
  0xe6   :  { %v691_v13 = vpop.f32.mrf.mxu0 }
  0xe7   :  { %695 = vmatmul.mubr.msk.bf16.vlgmr.msra.gmra.mxu1 %vm126_vm3, %v886_v10 }
  0xe8   :  { %699 = vmatpush3.bf16.msra.mxu1 %v183_v12  ;;  %700 = vmatprep.mubr.msk.bf16.mxu1 %vm833_vm0, %v832_v0 }
  0xe9   :  { %704 = vmatprep.subr.bf16.mxu1 %v832_v0 }
  0xef   :  { %701 = vmatmul.mubr.msk.bf16.vlgmr.msra.gmra.mxu1 %vm126_vm3, %v898_v14 }
  0xf0   :  { %705 = vmatpush3.bf16.msra.mxu1 %v774_v1  ;;  %712 = vmatprep.mubr.msk.bf16.mxu1 %vm833_vm0, %v832_v0 }
  0xf1   :  { %706 = vmatprep.subr.bf16.mxu1 %v832_v0 }
  0xf4   :  { %707 = vmatpush3.bf16.msra.mxu1 %v775_v2 }
  0xf5   :  { %708 = vmatprep.subr.bf16.mxu1 %v832_v0 }
  0xf8   :  { %709 = vmatpush3.bf16.msra.mxu1 %v776_v3 }
  0xf9   :  { %710 = vmatprep.subr.bf16.mxu1 %v832_v0 }
  0xfc   :  { %711 = vmatpush3.bf16.msra.mxu1 %v777_v4 }
  0xfd   :  { %734 = vmatprep.subr.bf16.mxu1 %v832_v0 }
  0xff   :  { %713 = vmatmul.mubr.msk.bf16.vlgmr.msra.gmra.mxu1 %vm76_vm1, %v227_v15 }
 0x100   :  { %736 = vmatprep.mubr.msk.bf16.mxu1 %vm833_vm0, %v832_v0 }
 0x1a7   :  { %v168_v19 = vpop.f32.mrf.mxu1 }
 0x1a9   :  { %v696_v20 = vpop.f32.mrf.mxu1 }
 0x1ab   :  { %v171_v21 = vpop.f32.mrf.mxu1 }
 0x1ad   :  { %v697_v22 = vpop.f32.mrf.mxu1 }
 0x1af   :  { %v219_v23 = vpop.f32.mrf.mxu1 }
 0x1b0   :  { %v220_v24 = vadd.f32 %v219_v23, %v168_v19 }
 0x1b1   :  { %v702_v25 = vpop.f32.mrf.mxu1 }
 0x1b3   :  { %v222_v26 = vpop.f32.mrf.mxu1 }
 0x1b4   :  { %v223_v27 = vadd.f32 %v222_v26, %v171_v21 }
 0x1b5   :  { %v703_v28 = vpop.f32.mrf.mxu1 }
 0x1bf   :  { %v265_v30 = vpop.f32.mrf.mxu1 }
 0x1c0   :  { %v271_v31 = vsub.f32 %v265_v30, %v226_v29 }
 0x1c1   :  { %v714_v32 = vpop.f32.mrf.mxu1 }
 0x1c2   :  { %v272_v33 = vpack.c.bf16 %v271_v31, %v271_v31 }
 0x1c3   :  { %v268_v34 = vpop.f32.mrf.mxu1 }
 0x1c4   :  { %v282_v35 = vsel %vm130_vm2, %v272_v33, 0 }
 0x1c5   :  { %v715_v37 = vpop.f32.mrf.mxu1  ;;  %717 = vmatpush3.bf16.msra.mxu0 %v282_v35 }
 0x1c6   :  { %722 = vmatprep.subr.bf16.mxu0 %v832_v0 }
 0x1c8   :  { %719 = vmatmul.mubr.msk.bf16.vlgmr.msra.gmra.mxu0 %vm126_vm3, %v921_v36 }
 0x1c9   :  { %723 = vmatpush3.bf16.msra.mxu0 %v781_v38  ;;  %730 = vmatprep.mubr.msk.bf16.mxu0 %vm833_vm0, %v832_v0 }
 0x1ca   :  { %724 = vmatprep.subr.bf16.mxu0 %v832_v0 }
 0x1cd   :  { %725 = vmatpush3.bf16.msra.mxu0 %v782_v39 }
 0x1ce   :  { %726 = vmatprep.subr.bf16.mxu0 %v832_v0 }
 0x1d1   :  { %727 = vmatpush3.bf16.msra.mxu0 %v783_v40 }
 0x1d2   :  { %728 = vmatprep.subr.bf16.mxu0 %v832_v0 }
 0x1d5   :  { %729 = vmatpush3.bf16.msra.mxu0 %v784_v41 }
 0x1d6   :  { %746 = vmatprep.subr.bf16.mxu0 %v832_v0 }
 0x1d8   :  { %731 = vmatmul.mubr.msk.bf16.vlgmr.msra.gmra.mxu0 %vm76_vm1, %v638_v42 }
 0x1d9   :  { %747 = vmatpush3.bf16.msra.mxu0 %v781_v38  ;;  %754 = vmatprep.mubr.msk.bf16.mxu0 %vm833_vm0, %v832_v0 }
 0x1da   :  { %748 = vmatprep.subr.bf16.mxu0 %v832_v0 }
 0x1dd   :  { %749 = vmatpush3.bf16.msra.mxu0 %v782_v39 }
 0x1de   :  { %750 = vmatprep.subr.bf16.mxu0 %v832_v0 }
 0x1e1   :  { %751 = vmatpush3.bf16.msra.mxu0 %v783_v40 }
 0x1e2   :  { %752 = vmatprep.subr.bf16.mxu0 %v832_v0 }
 0x1e5   :  { %753 = vmatpush3.bf16.msra.mxu0 %v784_v41 }
 0x288   :  { %v318_v44 = vpop.f32.mrf.mxu0 }
 0x289   :  { %v325_v45 = vadd.f32 %v318_v44, %v220_v24 }
 0x28a   :  { %v720_v46 = vpop.f32.mrf.mxu0 }
 0x28b   :  { %v337_v47 = vadd.f32 %v330_v43, %v325_v45 }
 0x28c   :  { %v321_v48 = vpop.f32.mrf.mxu0 }
 0x28d   :  { %339 = vst.msk [vmem:[#allocation5] sm:$0xff] %vm76_vm1, %v337_v47  ;;  %v326_v50 = vadd.f32 %v321_v48, %v223_v27 }
 0x28e   :  { %v721_v51 = vpop.f32.mrf.mxu0 }
 0x28f   :  { %v338_v52 = vadd.f32 %v335_v49, %v326_v50 }
 0x291   :  { %340 = vst.msk [vmem:[#allocation5 + $0x8] sm:$0xff] %vm76_vm1, %v338_v52 }
 0x298   :  { %v413_v53 = vpop.f32.mrf.mxu0 }
 0x299   :  { %v419_v54 = vpack.c.bf16 %v413_v53, %v413_v53 }
 0x29a   :  { %v732_v55 = vpop.f32.mrf.mxu0 }
 0x29b   :  { %v421_v56 = vsel %vm130_vm2, %v419_v54, 0  ;;  %v508_v57 = vadd.bf16 %v419_v54, %v419_v54 }
 0x29c   :  { %v416_v58 = vpop.f32.mrf.mxu0  ;;  %735 = vmatpush3.bf16.msra.mxu1 %v421_v56 }
 0x29d   :  { %755 = vmatmul.mubr.msk.bf16.vlgmr.msra.gmra.mxu0 %vm76_vm1, %v508_v57  ;;  %740 = vmatprep.subr.bf16.mxu1 %v832_v0 }
 0x29e   :  { %v733_v60 = vpop.f32.mrf.mxu0 }
 0x29f   :  { %737 = vmatmul.mubr.msk.bf16.vlgmr.msra.gmra.mxu1 %vm126_vm3, %v886_v10 }
 0x2a0   :  { %741 = vmatpush3.bf16.msra.mxu1 %v464_v59  ;;  %742 = vmatprep.mubr.msk.bf16.mxu1 %vm833_vm0, %v832_v0 }
 0x2a1   :  { %758 = vmatprep.subr.bf16.mxu1 %v832_v0 }
 0x2a7   :  { %743 = vmatmul.mubr.msk.bf16.vlgmr.msra.gmra.mxu1 %vm126_vm3, %v898_v14 }
 0x2a8   :  { %760 = vmatprep.mubr.msk.bf16.mxu1 %vm833_vm0, %v832_v0 }
 0x35d   :  { %v546_v62 = vpop.f32.mrf.mxu0 }
 0x35e   :  { %v552_v63 = vsub.f32 %v546_v62, %v507_v61 }
 0x35f   :  { %v756_v1 = vpop.f32.mrf.mxu0  ;;  %v457_v2 = vpop.f32.mrf.mxu1 }
 0x360   :  { %v553_v3 = vpack.c.bf16 %v552_v63, %v552_v63 }
 0x361   :  { %v549_v4 = vpop.f32.mrf.mxu0  ;;  %v738_v5 = vpop.f32.mrf.mxu1 }
 0x362   :  { %v555_v6 = vsel %vm130_vm2, %v553_v3, 0 }
 0x363   :  { %v757_v7 = vpop.f32.mrf.mxu0  ;;  %759 = vmatpush3.bf16.msra.mxu1 %v555_v6  ;;  %v460_v8 = vpop.f32.mrf.mxu1 }
 0x365   :  { %v739_v9 = vpop.f32.mrf.mxu1 }
 0x366   :  { %761 = vmatmul.mubr.msk.bf16.vlgmr.msra.gmra.mxu1 %vm126_vm3, %v921_v36 }
 0x367   :  { %v500_v10 = vpop.f32.mrf.mxu1 }
 0x368   :  { %v501_v11 = vadd.f32 %v500_v10, %v457_v2 }
 0x369   :  { %v744_v0 = vpop.f32.mrf.mxu1 }
 0x36b   :  { %v503_v12 = vpop.f32.mrf.mxu1 }
 0x36c   :  { %v504_v13 = vadd.f32 %v503_v12, %v460_v8 }
 0x36d   :  { %v745_v14 = vpop.f32.mrf.mxu1 }
 0x426   :  { %v591_v15 = vpop.f32.mrf.mxu1 }
 0x427   :  { %v598_v16 = vadd.f32 %v591_v15, %v501_v11 }
 0x428   :  { %v762_v17 = vpop.f32.mrf.mxu1 }
 0x429   :  { %v600_v18 = vadd.f32 %v598_v16, %v330_v43 }
 0x42a   :  { %v594_v19 = vpop.f32.mrf.mxu1 }
 0x42b   :  { %603 = vst.msk [vmem:[#allocation5 + $0x10] sm:$0xff] %vm76_vm1, %v600_v18  ;;  %v599_v20 = vadd.f32 %v594_v19, %v504_v13 }
 0x42c   :  { %v763_v21 = vpop.f32.mrf.mxu1 }
 0x42d   :  { %v601_v22 = vadd.f32 %v599_v20, %v335_v49 }
 0x42f   :  { %604 = vst.msk [vmem:[#allocation5 + $0x18] sm:$0xff] %vm76_vm1, %v601_v22 }
 0x430   :  { %816 = shalt.err (!%p813_p9)
}
 0x431   :  { %s836_s9 = smov 128   ;;  %s837_s10 = smov 8  }
 0x432   :  { %616 = dma.vmem_to_hbm [thread:$0]  %s611_s7, 512, %s968_s4, [#allocation4], %s836_s9, %s836_s9, %s837_s10  }
 0x433   :  { %827 = dma.done.wait [#allocation4], 512  }
 0x434   :  { %828 = vsyncadd [#allocation4], 4294966784 }
 0x435   :  { %620 = vsyncpa [#allocation3], 1 }
 0x436   :  { %621 = vsyncpa [#allocation4], 1 }

</bundles_post_ra>
